<compile_context>
chip_gen: v6e
topology: v6e:2x2x1
jax: 0.10.0
libtpu: 0.0.40
codegen_flags: <defaults>
</compile_context>

<pallas_src>
import jax
import jax.numpy as jnp
from jax.experimental import pallas as pl
from jax.experimental.pallas import tpu as pltpu

SMOOTH = 1.0
_LANES = 128


def _vmem_capacity_bytes():
    """Best-effort per-core VMEM capacity query with safe fallbacks."""
    try:
        info = pltpu.get_tpu_info()
        for name in ("vmem_capacity_bytes", "vmem_bytes", "vmem_size_bytes"):
            v = getattr(info, name, None)
            if isinstance(v, int) and v > 0:
                return v
    except Exception:
        pass
    try:
        kind = jax.devices()[0].device_kind.lower()
        if "v7" in kind:
            return 64 * 1024 * 1024
    except Exception:
        pass
    return 128 * 1024 * 1024


def _make_dice_kernel(tr, lanes, tail_rows, sub):
    """Grid = (N*2, row_tiles); row axis is the reduction axis.

    yp_ref / yt_ref : (1, tr, lanes) input tiles (native dtype, upcast here)
    o_ref           : (1, 2, sub, lanes) resident f32 accumulator block
                      o[:, 0] = lane/sublane partials of sum(pred * true)
                      o[:, 1] = lane/sublane partials of sum(pred) + sum(true)
    """
    grouped = sub == 8  # deferred sublane reduce path (tr % 8 == 0)

    def kernel(yp_ref, yt_ref, o_ref):
        j = pl.program_id(1)

        @pl.when(j == 0)
        def _init():
            o_ref[...] = jnp.zeros_like(o_ref)

        yp = yp_ref[0].astype(jnp.float32)   # (tr, lanes)
        yt = yt_ref[0].astype(jnp.float32)

        def accumulate(p, t):
            prod = p * t
            ssum = p + t
            if grouped:
                # VALU-only: sum over row-groups, keep all 8 sublanes + lanes.
                ci = jnp.sum(prod.reshape(tr // 8, 8, lanes), axis=0)  # (8, lanes)
                cs = jnp.sum(ssum.reshape(tr // 8, 8, lanes), axis=0)
            else:
                ci = jnp.sum(prod, axis=0, keepdims=True)              # (1, lanes)
                cs = jnp.sum(ssum, axis=0, keepdims=True)
            o_ref[0, 0] += ci
            o_ref[0, 1] += cs

        if tail_rows == tr:
            accumulate(yp, yt)
        else:
            last = pl.num_programs(1) - 1

            @pl.when(j != last)
            def _body():
                accumulate(yp, yt)

            @pl.when(j == last)
            def _tail():
                # Static valid-row count for the ragged trailing tile; zeroing
                # is sum-neutral and also scrubs unspecified OOB block data.
                row = jax.lax.broadcasted_iota(jnp.int32, (tr, lanes), 0)
                keep = row < tail_rows
                accumulate(jnp.where(keep, yp, 0.0), jnp.where(keep, yt, 0.0))

    return kernel


def dice_loss(y_pred, y_true, weights=None, target_block_bytes=None):
    assert y_pred.shape == y_true.shape
    n, c, h, w_sp = y_pred.shape
    assert c == 2, "DiceLoss indexes exactly channels 0 and 1"

    if weights is None:
        weights = jnp.array([1.0, 1.0], dtype=jnp.float32)
    w = jnp.asarray(weights, dtype=jnp.float32).reshape(2)

    hw = h * w_sp
    b = n * 2  # channel folded into the parallel axis

    # Free reshapes only (no jnp.pad / no extra HBM copies).
    if hw % _LANES == 0:
        rows, lanes = hw // _LANES, _LANES          # lane-dense flat view
    else:
        rows, lanes = h, w_sp                        # full-width lane blocks
    yp = y_pred.reshape(b, rows, lanes)
    yt = y_true.reshape(b, rows, lanes)

    # Per-generation block sizing (f32-equivalent bytes per input per step).
    itemsize = jnp.dtype(y_pred.dtype).itemsize
    vmem_cap = _vmem_capacity_bytes()
    small_vmem = vmem_cap <= 96 * 1024 * 1024        # v7x-class (64 MiB / TC)
    if target_block_bytes is None:
        target_block_bytes = (4 if small_vmem else 8) * 1024 * 1024

    tr_target = max(8, (target_block_bytes // (lanes * 4)) // 8 * 8)
    if rows <= tr_target:
        tr = rows                                    # full-extent row block
        grid_rows = 1
        tail_rows = tr
    else:
        tr = tr_target                               # multiple of 8
        grid_rows = pl.cdiv(rows, tr)
        tail_rows = rows - (grid_rows - 1) * tr      # masked in-kernel
    sub = 8 if tr % 8 == 0 else 1

    # VMEM budget: 2 inputs x 2 pipeline buffers (native dtype) + f32 upcasts
    # and elementwise intermediates, plus slack for the tiny output block.
    native_block = tr * lanes * itemsize
    f32_block = tr * lanes * 4
    est = 4 * native_block + 4 * f32_block + (2 << 20)
    vmem_limit = int(min(max(est, 16 * 1024 * 1024), vmem_cap * 3 // 4))

    out = pl.pallas_call(
        _make_dice_kernel(tr, lanes, tail_rows, sub),
        out_shape=jax.ShapeDtypeStruct((b, 2, sub, lanes), jnp.float32),
        grid=(b, grid_rows),
        in_specs=[
            pl.BlockSpec((1, tr, lanes), lambda i, j: (i, j, 0)),
            pl.BlockSpec((1, tr, lanes), lambda i, j: (i, j, 0)),
        ],
        out_specs=pl.BlockSpec((1, 2, sub, lanes), lambda i, j: (i, 0, 0, 0)),
        compiler_params=pltpu.CompilerParams(
            dimension_semantics=("parallel", "arbitrary"),
            vmem_limit_bytes=vmem_limit),
    )(yp, yt)

    # Tiny final combine in plain JAX: lane/sublane/batch partials -> scalar.
    totals = jnp.sum(out.reshape(n, 2, 2, sub * lanes), axis=(0, 3))  # (chan, qty)
    inter = totals[:, 0]                              # per-channel sum(p*t)
    sums = totals[:, 1]                               # per-channel sum(p)+sum(t)
    dsc = (2.0 * inter + SMOOTH) / (sums + SMOOTH)
    return 1.0 - jnp.sum(w * dsc)


def dice_loss_reference(y_pred, y_true, w):
    p1 = y_pred[:, 0].reshape(-1)
    t1 = y_true[:, 0].reshape(-1)
    p2 = y_pred[:, 1].reshape(-1)
    t2 = y_true[:, 1].reshape(-1)
    d1 = (2.0 * jnp.sum(p1 * t1) + SMOOTH) / (jnp.sum(p1) + jnp.sum(t1) + SMOOTH)
    d2 = (2.0 * jnp.sum(p2 * t2) + SMOOTH) / (jnp.sum(p2) + jnp.sum(t2) + SMOOTH)
    return 1.0 - w[0] * d1 - w[1] * d2


if __name__ == "__main__":
    key = jax.random.PRNGKey(0)
    k1, k2 = jax.random.split(key)

    # N=2, C=2 (required by the module), H=W=16
    shape = (2, 2, 16, 16)
    y_pred = jax.nn.sigmoid(jax.random.normal(k1, shape, dtype=jnp.float32))
    y_true = (jax.random.uniform(k2, shape) > 0.5).astype(jnp.float32)

    # deterministic "parameter" from __init__: weights = [1, 1]
    weights = jnp.array([1.0, 1.0], dtype=jnp.float32)

    loss = jax.jit(dice_loss)(y_pred, y_true, weights)
    loss = jax.block_until_ready(loss)

    expected = dice_loss_reference(y_pred, y_true, weights)
    assert jnp.allclose(loss, expected, rtol=1e-5, atol=1e-5), (loss, expected)

    print("KERNEL_OK")
</pallas_src>

<mosaic_0001>
module attributes {stable_mosaic.version = 11 : i64} {
  func.func @kernel(%arg0: i32, %arg1: i32, %arg2: memref<1x2x128xf32, #tpu.memory_space<vmem>>, %arg3: memref<1x2x128xf32, #tpu.memory_space<vmem>>, %arg4: memref<1x2x1x128xf32, #tpu.memory_space<vmem>>) attributes {dimension_semantics = [#tpu.dimension_semantics<parallel>, #tpu.dimension_semantics<arbitrary>], iteration_bounds = array<i64: 4, 1>, scalar_prefetch = 0 : i64, scratch_operands = 0 : i64, tpu.core_type = #tpu.core_type<tc>, window_params = [{transform_indices = @transform_0, window_bounds = array<i64: 1, 2, 128>}, {transform_indices = @transform_1, window_bounds = array<i64: 1, 2, 128>}, {transform_indices = @transform_2, window_bounds = array<i64: 1, 2, 1, 128>}]} {
    %c0_i32 = arith.constant 0 : i32
    %0 = arith.cmpi eq, %arg1, %c0_i32 : i32
    %1 = arith.extui %0 : i1 to i32
    %c0_i32_0 = arith.constant 0 : i32
    %2 = arith.cmpi ne, %1, %c0_i32_0 : i32
    scf.if %2 {
      %cst_22 = arith.constant 0.000000e+00 : f32
      %25 = vector.broadcast %cst_22 : f32 to vector<1x2x1x128xf32>
      %c0_23 = arith.constant 0 : index
      %c0_24 = arith.constant 0 : index
      %c0_25 = arith.constant 0 : index
      %c0_26 = arith.constant 0 : index
      %26 = vector.load %arg4[%c0_23, %c0_24, %c0_25, %c0_26] : memref<1x2x1x128xf32, #tpu.memory_space<vmem>>, vector<1x2x1x128xf32>
      tpu.vector_store %arg4[%c0_23, %c0_24, %c0_25, %c0_26], %25 {strides = array<i32>} : memref<1x2x1x128xf32, #tpu.memory_space<vmem>>, vector<1x2x1x128xf32>,
    } else {
    }
    %c0 = arith.constant 0 : index
    %c0_1 = arith.constant 0 : index
    %c0_2 = arith.constant 0 : index
    %3 = vector.load %arg2[%c0, %c0_1, %c0_2] : memref<1x2x128xf32, #tpu.memory_space<vmem>>, vector<1x2x128xf32>
    %4 = vector.shape_cast %3 : vector<1x2x128xf32> to vector<2x128xf32>
    %c0_3 = arith.constant 0 : index
    %c0_4 = arith.constant 0 : index
    %c0_5 = arith.constant 0 : index
    %5 = vector.load %arg3[%c0_3, %c0_4, %c0_5] : memref<1x2x128xf32, #tpu.memory_space<vmem>>, vector<1x2x128xf32>
    %6 = vector.shape_cast %5 : vector<1x2x128xf32> to vector<2x128xf32>
    %7 = arith.mulf %4, %6 : vector<2x128xf32>
    %8 = arith.addf %4, %6 : vector<2x128xf32>
    %cst = arith.constant dense<0.000000e+00> : vector<128xf32>
    %9 = vector.multi_reduction <add>, %7, %cst [0] : vector<2x128xf32> to vector<128xf32>
    %10 = vector.shape_cast %9 : vector<128xf32> to vector<1x128xf32>
    %cst_6 = arith.constant dense<0.000000e+00> : vector<128xf32>
    %11 = vector.multi_reduction <add>, %8, %cst_6 [0] : vector<2x128xf32> to vector<128xf32>
    %12 = vector.shape_cast %11 : vector<128xf32> to vector<1x128xf32>
    %c0_7 = arith.constant 0 : index
    %c0_8 = arith.constant 0 : index
    %c0_9 = arith.constant 0 : index
    %c0_10 = arith.constant 0 : index
    %13 = vector.load %arg4[%c0_7, %c0_8, %c0_9, %c0_10] : memref<1x2x1x128xf32, #tpu.memory_space<vmem>>, vector<1x1x1x128xf32>
    %14 = vector.shape_cast %13 : vector<1x1x1x128xf32> to vector<1x128xf32>
    %15 = arith.addf %14, %10 : vector<1x128xf32>
    %c0_11 = arith.constant 0 : index
    %c0_12 = arith.constant 0 : index
    %c0_13 = arith.constant 0 : index
    %c0_14 = arith.constant 0 : index
    %16 = vector.load %arg4[%c0_11, %c0_12, %c0_13, %c0_14] : memref<1x2x1x128xf32, #tpu.memory_space<vmem>>, vector<1x1x1x128xf32>
    %17 = vector.shape_cast %16 : vector<1x1x1x128xf32> to vector<1x128xf32>
    %18 = vector.shape_cast %15 : vector<1x128xf32> to vector<1x1x1x128xf32>
    tpu.vector_store %arg4[%c0_11, %c0_12, %c0_13, %c0_14], %18 {strides = array<i32>} : memref<1x2x1x128xf32, #tpu.memory_space<vmem>>, vector<1x1x1x128xf32>,
    %c0_15 = arith.constant 0 : index
    %c1 = arith.constant 1 : index
    %c0_16 = arith.constant 0 : index
    %c0_17 = arith.constant 0 : index
    %19 = vector.load %arg4[%c0_15, %c1, %c0_16, %c0_17] : memref<1x2x1x128xf32, #tpu.memory_space<vmem>>, vector<1x1x1x128xf32>
    %20 = vector.shape_cast %19 : vector<1x1x1x128xf32> to vector<1x128xf32>
    %21 = arith.addf %20, %12 : vector<1x128xf32>
    %c0_18 = arith.constant 0 : index
    %c1_19 = arith.constant 1 : index
    %c0_20 = arith.constant 0 : index
    %c0_21 = arith.constant 0 : index
    %22 = vector.load %arg4[%c0_18, %c1_19, %c0_20, %c0_21] : memref<1x2x1x128xf32, #tpu.memory_space<vmem>>, vector<1x1x1x128xf32>
    %23 = vector.shape_cast %22 : vector<1x1x1x128xf32> to vector<1x128xf32>
    %24 = vector.shape_cast %21 : vector<1x128xf32> to vector<1x1x1x128xf32>
    tpu.vector_store %arg4[%c0_18, %c1_19, %c0_20, %c0_21], %24 {strides = array<i32>} : memref<1x2x1x128xf32, #tpu.memory_space<vmem>>, vector<1x1x1x128xf32>,
    return
  }
  func.func @transform_0(%arg0: i32, %arg1: i32) -> (i32, i32, i32) {
    %c0_i32 = arith.constant 0 : i32
    %c0_i32_0 = arith.constant 0 : i32
    return %arg0, %arg1, %c0_i32 : i32, i32, i32
  }
  func.func @transform_1(%arg0: i32, %arg1: i32) -> (i32, i32, i32) {
    %c0_i32 = arith.constant 0 : i32
    %c0_i32_0 = arith.constant 0 : i32
    return %arg0, %arg1, %c0_i32 : i32, i32, i32
  }
  func.func @transform_2(%arg0: i32, %arg1: i32) -> (i32, i32, i32, i32) {
    %c0_i32 = arith.constant 0 : i32
    %c0_i32_0 = arith.constant 0 : i32
    %c0_i32_1 = arith.constant 0 : i32
    %c0_i32_2 = arith.constant 0 : i32
    return %arg0, %c0_i32, %c0_i32_0, %c0_i32_1 : i32, i32, i32, i32
  }
}

</mosaic_0001>

<bundles_post_ra>
// kernel: dice_loss.1
= control target key start
LH: loop header
LB: loop body
LE: loop exit
PB: predicated region body
PF: predicated region fallthrough
CT: control target
= control target key end

     0   :  { %s378_s9 = smov 0   ;;  %s380_s10 = smov 0   ;;  %s414_s0 = inlined_call_operand.vmem [shape: f32[4,2,128], index: 0, kind: input, shape index: {}]   ;;  %s415_s1 = inlined_call_operand.vmem [shape: f32[4,2,128], index: 1, kind: input, shape index: {}]   ;;  %s416_s2 = inlined_call_operand.vmem [shape: f32[4,2,1,128], index: 2, kind: output, shape index: {}]  }
   0x1   :  { %s382_s11 = smov 0  }
   0x2 LB: > { %s24_s12 = sadd.s32 1, %s356_s10  ;;  %p305_p0 = scmp.ge.s32.totalorder %s360_s11, 1  ;;  %s360_s11 = sphi %s382_s11, %s12_s11   ;;  %s356_s10 = sphi %s380_s10, %s418_s10   ;;  %s352_s9 = sphi %s378_s9, %s417_s9  }
   0x3   : > { %p26_p1 = scmp.ge.s32.totalorder %s24_s12, 4  ;;  %p142_p2 = scmp.lt.s32.totalorder %s360_s11, 5 }
   0x5   : > { %s420_s12 = smov (%p26_p1, %s24_s12), 0  ;;  %p143_p3 = pnand %p305_p0, %p142_p2 }
   0x6   : > { %p172_p4 = scmp.lt.s32.totalorder (!%p143_p3), %s352_s9, 3 }
   0x7   : > { %146 = sbr.rel (%p143_p3) target bundleno = 35 (0x23), region = 28 }
   0xc   : > { %s422_s9 = smov (!%p172_p4, %s352_s9), 3  ;;  %vm200_vm0 = vcmask 1041408   ;;  %v362_v2 = vmov 0.0  }
   0xd   : > { %s306_s13 = sshll.u32 %s422_s9, 1 }
   0xe   : > { %s178_s16 = scalar_lea.vmem %s414_s0, %s306_s13  ;;  %s185_s19 = scalar_lea.vmem %s415_s1, %s306_s13 }
   0xf   : > { %s189_s22 = scalar_lea.vmem %s416_s2, %s306_s13  ;;  %v196_v0 = vld [vmem:[%s178_s16] sm:$0x3] }
  0x10   : > { %v197_v1 = vld [vmem:[%s185_s19] sm:$0x3]  ;;  %194 = vst [vmem:[%s189_s22] sm:$0x1] %v362_v2  ;;  %195 = vst [vmem:[%s189_s22 + $0x1] sm:$0x1] %v362_v2 }
  0x11   : > { %v198_v3 = vmul.f32 %v197_v1, %v196_v0  ;;  %v199_v4 = vadd.f32 %v197_v1, %v196_v0 }
  0x13   : > { %v201_v5 = vsel %vm200_vm0, %v198_v3, 0.0  ;;  %v208_v6 = vsel %vm200_vm0, %v199_v4, 0.0 }
  0x14   : > { %v202_v7 = vrot.slane %v201_v5, 4  ;;  %v209_v8 = vrot.slane %v208_v6, 4 }
  0x16   : > { %v203_v9 = vadd.f32 %v202_v7, %v201_v5  ;;  %v210_v10 = vadd.f32 %v209_v8, %v208_v6 }
  0x17   : > { %v215_v17 = vld [vmem:[%s189_s22] sm:$0x1]  ;;  %v309_v18 = vld [vmem:[%s189_s22 + $0x1] sm:$0x1] }
  0x18   : > { %v204_v11 = vrot.slane %v203_v9, 2  ;;  %v211_v12 = vrot.slane %v210_v10, 2 }
  0x1a   : > { %v205_v13 = vadd.f32 %v204_v11, %v203_v9  ;;  %v212_v14 = vadd.f32 %v211_v12, %v210_v10 }
  0x1c   : > { %v206_v15 = vrot.slane %v205_v13, 1  ;;  %v213_v16 = vrot.slane %v212_v14, 1 }
  0x1e   : > { %v207_v19 = vadd.f32 %v206_v15, %v205_v13  ;;  %v214_v20 = vadd.f32 %v213_v16, %v212_v14 }
  0x20   : > { %v216_v21 = vadd.f32 %v215_v17, %v207_v19  ;;  %v220_v22 = vadd.f32 %v309_v18, %v214_v20 }
  0x22   : > { %217 = vst [vmem:[%s189_s22] sm:$0x1] %v216_v21  ;;  %310 = vst [vmem:[%s189_s22 + $0x1] sm:$0x1] %v220_v22 }
  0x23 PF: > { %s12_s11 = sadd.s32 1, %s360_s11   ;;  %s417_s9 = smov %s356_s10 }
  0x24   : > { %p9_p5 = scmp.ge.s32.totalorder %s12_s11, 6   ;;  %s418_s10 = smov %s420_s12 }
  0x26   :  { %11 = sbr.rel (!%p9_p5) target bundleno = 2 (0x2), region = 66 }

</bundles_post_ra>
